<compile_context>
chip_gen: v7x
topology: tpu7x:2x2x1
jax: 0.10.0
libtpu: 0.0.40
codegen_flags: <defaults>
</compile_context>

<pallas_src>
import functools

import jax
import jax.numpy as jnp
from jax.experimental import pallas as pl
from jax.experimental.pallas import tpu as pltpu

NUM_CLASSES = 4
EPSILON = 1e-10
LANES = 128
SUBLANES = 8

# accumulator slab rows: [O, T1, T2, P1, P2]
_N_ACC = 5


def _kappa_moments_kernel(yp_ref, yt_ref, acc_ref, *, num_classes, block_rows):
    """Per-tile moment accumulation for quadratic weighted-kappa loss.

    yp_ref : (block_rows, 128) f32  raw regression predictions (zero-padded)
    yt_ref : (block_rows, 128) f32  integer-valued labels (already truncated)
    acc_ref: (5, 8, 128) f32 resident partial-sum slab for this core-split:
             [sum (yp-yt)^2, sum yt, sum yt^2, sum ypc, sum ypc^2+perc(1-perc)]
    """
    t = pl.program_id(1)

    @pl.when(t == 0)
    def _():
        acc_ref[...] = jnp.zeros_like(acc_ref)

    yp = yp_ref[...]
    yt = yt_ref[...]

    # O term uses the *unclamped* predictions (matches the torch module).
    diff = yp - yt
    o_el = diff * diff

    # hist_pred moments via floor/ceil interpolation of clamped predictions:
    #   sum_j j   * hist_pred[j] = sum_n ypc_n
    #   sum_j j^2 * hist_pred[j] = sum_n ypc_n^2 + perc_n * (1 - perc_n)
    ypc = jnp.clip(yp, 0.0, float(num_classes - 1))
    perc = ypc - jnp.floor(ypc)                    # == ypc % 1 (ypc >= 0)
    p2_el = ypc * ypc + perc * (1.0 - perc)

    def fold(x):
        # (block_rows, 128) -> (8, 128): groups of 8 sublanes align with the
        # native (8,128) vreg tiling, so this is pure VPU vreg adds (no XLU).
        return x.reshape(block_rows // SUBLANES, SUBLANES, LANES).sum(axis=0)

    acc_ref[0, :, :] += fold(o_el)
    acc_ref[1, :, :] += fold(yt)
    acc_ref[2, :, :] += fold(yt * yt)
    acc_ref[3, :, :] += fold(ypc)
    acc_ref[4, :, :] += fold(p2_el)


def weighted_kappa_loss(y_pred, y_true, num_classes=NUM_CLASSES, log=True,
                        epsilon=EPSILON, block_rows=2048, core_splits=2):
    """Quadratic weighted-kappa loss (regression=True).

    y_pred: (N, 1) float predictions; y_true: (N, 1) labels in [0, num_classes)
    (out-of-range labels would make torch's eye-indexing error, so they are
    assumed valid here as well).
    """
    N = int(y_pred.shape[0])
    C = num_classes

    yp = y_pred.astype(jnp.float32).reshape(-1)
    # mimic torch .long(): truncate toward zero, back to f32 for the VPU
    yt = y_true.astype(jnp.int32).astype(jnp.float32).reshape(-1)

    # --- dense (rows, 128) tiling --------------------------------------------
    rows_needed = pl.cdiv(N, LANES)
    # split the sample range across (up to) 2 TensorCores when big enough
    nc = core_splits if rows_needed >= core_splits * SUBLANES else 1
    rows_per_core = pl.cdiv(rows_needed, nc)
    tiles_per_core = pl.cdiv(rows_per_core, block_rows)
    br = pl.cdiv(rows_per_core, tiles_per_core)
    br = ((br + SUBLANES - 1) // SUBLANES) * SUBLANES      # sublane multiple
    rows_padded = nc * tiles_per_core * br
    n_padded = rows_padded * LANES

    # zero padding contributes exactly 0 to every accumulated moment
    pad = n_padded - N
    yp = jnp.pad(yp, (0, pad)).reshape(rows_padded, LANES)
    yt = jnp.pad(yt, (0, pad)).reshape(rows_padded, LANES)

    partials = pl.pallas_call(
        functools.partial(_kappa_moments_kernel, num_classes=C, block_rows=br),
        out_shape=jax.ShapeDtypeStruct((nc * _N_ACC, SUBLANES, LANES),
                                       jnp.float32),
        grid=(nc, tiles_per_core),
        in_specs=[
            pl.BlockSpec((br, LANES), lambda c, t: (c * tiles_per_core + t, 0)),
            pl.BlockSpec((br, LANES), lambda c, t: (c * tiles_per_core + t, 0)),
        ],
        out_specs=pl.BlockSpec((_N_ACC, SUBLANES, LANES),
                               lambda c, t: (c, 0, 0)),
        compiler_params=pltpu.CompilerParams(
            dimension_semantics=("parallel", "arbitrary"),
            vmem_limit_bytes=32 * 1024 * 1024),
    )(yp, yt)

    # --- tiny scalar epilogue in JAX -----------------------------------------
    sums = partials.reshape(nc, _N_ACC, -1).sum(axis=(0, 2))      # (5,)
    O, T1, T2, P1, P2 = sums[0], sums[1], sums[2], sums[3], sums[4]
    n = jnp.float32(N)
    # W[i,j] = (i-j)^2  =>  E = (T2*P0 - 2*T1*P1 + T0*P2)/N  with  T0 = P0 = N
    E = T2 + P2 - 2.0 * T1 * P1 / n
    loss = O / (E + jnp.float32(epsilon))
    return jnp.log(loss) if log else loss


def _reference_loss(y_pred, y_true, num_classes, eps=EPSILON, log=True):
    """Pure-JAX mirror of the PyTorch module (regression=True)."""
    C = num_classes
    N = y_pred.shape[0]
    yt = y_true.astype(jnp.int32)
    r = jnp.arange(C, dtype=jnp.float32)
    W = (r[:, None] - r[None, :]) ** 2
    eye = jnp.eye(C, dtype=jnp.float32)

    O = jnp.sum((y_pred.astype(jnp.float32) - yt.astype(jnp.float32)) ** 2)
    hist_true = jnp.sum(eye[yt.reshape(-1)], axis=0)

    ypc = jnp.clip(y_pred.astype(jnp.float32), 0.0, C - 1).reshape(-1)
    fl = jnp.floor(ypc).astype(jnp.int32)
    ce = jnp.ceil(ypc).astype(jnp.int32)
    perc = ypc % 1.0
    hist_pred = jnp.sum((1.0 - perc)[:, None] * eye[fl] + perc[:, None] * eye[ce],
                        axis=0)

    E = jnp.sum(W * (hist_true[:, None] * hist_pred[None, :]) / N)
    loss = O / (E + eps)
    return jnp.log(loss) if log else loss


if __name__ == "__main__":
    key = jax.random.PRNGKey(0)
    k1, k2, k3, k4 = jax.random.split(key, 4)
    C = NUM_CLASSES

    # case 1: small batch (single tile, single core-split)
    N = 8
    y_pred = jax.random.uniform(k1, (N, 1), jnp.float32, 0.0, float(C - 1))
    y_true = jax.random.randint(k2, (N, 1), 0, C).astype(jnp.float32)
    loss = jax.block_until_ready(weighted_kappa_loss(y_pred, y_true, C, log=True))
    ref = _reference_loss(y_pred, y_true, C, log=True)
    assert jnp.allclose(loss, ref, rtol=1e-4, atol=1e-4), (loss, ref)

    # case 2: force the multi-tile + 2-way core-split path (tiny block_rows),
    # including out-of-range predictions that exercise the clamp.
    N2 = 3000
    y_pred2 = jax.random.uniform(k3, (N2, 1), jnp.float32, -0.5, float(C - 1) + 0.5)
    y_true2 = jax.random.randint(k4, (N2, 1), 0, C).astype(jnp.float32)
    loss2 = jax.block_until_ready(
        weighted_kappa_loss(y_pred2, y_true2, C, log=True, block_rows=8))
    ref2 = _reference_loss(y_pred2, y_true2, C, log=True)
    assert jnp.allclose(loss2, ref2, rtol=1e-4, atol=1e-4), (loss2, ref2)

    print("KERNEL_OK")
</pallas_src>

<mosaic_0001>
module attributes {stable_mosaic.version = 11 : i64} {
  func.func @_kappa_moments_kernel(%arg0: i32, %arg1: i32, %arg2: memref<8x128xf32, #tpu.memory_space<vmem>>, %arg3: memref<8x128xf32, #tpu.memory_space<vmem>>, %arg4: memref<5x8x128xf32, #tpu.memory_space<vmem>>) attributes {dimension_semantics = [#tpu.dimension_semantics<parallel>, #tpu.dimension_semantics<arbitrary>], iteration_bounds = array<i64: 1, 1>, scalar_prefetch = 0 : i64, scratch_operands = 0 : i64, tpu.core_type = #tpu.core_type<tc>, window_params = [{transform_indices = @transform_0, window_bounds = array<i64: 8, 128>}, {transform_indices = @transform_1, window_bounds = array<i64: 8, 128>}, {transform_indices = @transform_2, window_bounds = array<i64: 5, 8, 128>}]} {
    %c0_i32 = arith.constant 0 : i32
    %0 = arith.cmpi eq, %arg1, %c0_i32 : i32
    %1 = arith.extui %0 : i1 to i32
    %c0_i32_0 = arith.constant 0 : i32
    %2 = arith.cmpi ne, %1, %c0_i32_0 : i32
    scf.if %2 {
      %cst_37 = arith.constant 0.000000e+00 : f32
      %59 = vector.broadcast %cst_37 : f32 to vector<5x8x128xf32>
      %c0_38 = arith.constant 0 : index
      %c0_39 = arith.constant 0 : index
      %c0_40 = arith.constant 0 : index
      %60 = vector.load %arg4[%c0_38, %c0_39, %c0_40] : memref<5x8x128xf32, #tpu.memory_space<vmem>>, vector<5x8x128xf32>
      tpu.vector_store %arg4[%c0_38, %c0_39, %c0_40], %59 {strides = array<i32>} : memref<5x8x128xf32, #tpu.memory_space<vmem>>, vector<5x8x128xf32>,
    } else {
    }
    %c0 = arith.constant 0 : index
    %c0_1 = arith.constant 0 : index
    %3 = vector.load %arg2[%c0, %c0_1] : memref<8x128xf32, #tpu.memory_space<vmem>>, vector<8x128xf32>
    %c0_2 = arith.constant 0 : index
    %c0_3 = arith.constant 0 : index
    %4 = vector.load %arg3[%c0_2, %c0_3] : memref<8x128xf32, #tpu.memory_space<vmem>>, vector<8x128xf32>
    %5 = arith.subf %3, %4 : vector<8x128xf32>
    %6 = arith.mulf %5, %5 : vector<8x128xf32>
    %cst = arith.constant 0.000000e+00 : f32
    %cst_4 = arith.constant 3.000000e+00 : f32
    %7 = vector.broadcast %cst : f32 to vector<8x128xf32>
    %8 = arith.maximumf %7, %3 : vector<8x128xf32>
    %9 = vector.broadcast %cst_4 : f32 to vector<8x128xf32>
    %10 = arith.minimumf %9, %8 : vector<8x128xf32>
    %11 = math.floor %10 : vector<8x128xf32>
    %12 = arith.subf %10, %11 : vector<8x128xf32>
    %13 = arith.mulf %10, %10 : vector<8x128xf32>
    %cst_5 = arith.constant 1.000000e+00 : f32
    %14 = vector.broadcast %cst_5 : f32 to vector<8x128xf32>
    %15 = arith.subf %14, %12 : vector<8x128xf32>
    %16 = arith.mulf %12, %15 : vector<8x128xf32>
    %17 = arith.addf %13, %16 : vector<8x128xf32>
    %c0_6 = arith.constant 0 : index
    %c0_7 = arith.constant 0 : index
    %c0_8 = arith.constant 0 : index
    %18 = vector.load %arg4[%c0_6, %c0_7, %c0_8] : memref<5x8x128xf32, #tpu.memory_space<vmem>>, vector<1x8x128xf32>
    %19 = vector.shape_cast %18 : vector<1x8x128xf32> to vector<8x128xf32>
    %20 = vector.shape_cast %6 : vector<8x128xf32> to vector<1x8x128xf32>
    %cst_9 = arith.constant dense<0.000000e+00> : vector<8x128xf32>
    %21 = vector.multi_reduction <add>, %20, %cst_9 [0] : vector<1x8x128xf32> to vector<8x128xf32>
    %22 = arith.addf %19, %21 : vector<8x128xf32>
    %c0_10 = arith.constant 0 : index
    %c0_11 = arith.constant 0 : index
    %c0_12 = arith.constant 0 : index
    %23 = vector.load %arg4[%c0_10, %c0_11, %c0_12] : memref<5x8x128xf32, #tpu.memory_space<vmem>>, vector<1x8x128xf32>
    %24 = vector.shape_cast %23 : vector<1x8x128xf32> to vector<8x128xf32>
    %25 = vector.shape_cast %22 : vector<8x128xf32> to vector<1x8x128xf32>
    tpu.vector_store %arg4[%c0_10, %c0_11, %c0_12], %25 {strides = array<i32>} : memref<5x8x128xf32, #tpu.memory_space<vmem>>, vector<1x8x128xf32>,
    %c1 = arith.constant 1 : index
    %c0_13 = arith.constant 0 : index
    %c0_14 = arith.constant 0 : index
    %26 = vector.load %arg4[%c1, %c0_13, %c0_14] : memref<5x8x128xf32, #tpu.memory_space<vmem>>, vector<1x8x128xf32>
    %27 = vector.shape_cast %26 : vector<1x8x128xf32> to vector<8x128xf32>
    %28 = vector.shape_cast %4 : vector<8x128xf32> to vector<1x8x128xf32>
    %cst_15 = arith.constant dense<0.000000e+00> : vector<8x128xf32>
    %29 = vector.multi_reduction <add>, %28, %cst_15 [0] : vector<1x8x128xf32> to vector<8x128xf32>
    %30 = arith.addf %27, %29 : vector<8x128xf32>
    %c1_16 = arith.constant 1 : index
    %c0_17 = arith.constant 0 : index
    %c0_18 = arith.constant 0 : index
    %31 = vector.load %arg4[%c1_16, %c0_17, %c0_18] : memref<5x8x128xf32, #tpu.memory_space<vmem>>, vector<1x8x128xf32>
    %32 = vector.shape_cast %31 : vector<1x8x128xf32> to vector<8x128xf32>
    %33 = vector.shape_cast %30 : vector<8x128xf32> to vector<1x8x128xf32>
    tpu.vector_store %arg4[%c1_16, %c0_17, %c0_18], %33 {strides = array<i32>} : memref<5x8x128xf32, #tpu.memory_space<vmem>>, vector<1x8x128xf32>,
    %c2 = arith.constant 2 : index
    %c0_19 = arith.constant 0 : index
    %c0_20 = arith.constant 0 : index
    %34 = vector.load %arg4[%c2, %c0_19, %c0_20] : memref<5x8x128xf32, #tpu.memory_space<vmem>>, vector<1x8x128xf32>
    %35 = vector.shape_cast %34 : vector<1x8x128xf32> to vector<8x128xf32>
    %36 = arith.mulf %4, %4 : vector<8x128xf32>
    %37 = vector.shape_cast %36 : vector<8x128xf32> to vector<1x8x128xf32>
    %cst_21 = arith.constant dense<0.000000e+00> : vector<8x128xf32>
    %38 = vector.multi_reduction <add>, %37, %cst_21 [0] : vector<1x8x128xf32> to vector<8x128xf32>
    %39 = arith.addf %35, %38 : vector<8x128xf32>
    %c2_22 = arith.constant 2 : index
    %c0_23 = arith.constant 0 : index
    %c0_24 = arith.constant 0 : index
    %40 = vector.load %arg4[%c2_22, %c0_23, %c0_24] : memref<5x8x128xf32, #tpu.memory_space<vmem>>, vector<1x8x128xf32>
    %41 = vector.shape_cast %40 : vector<1x8x128xf32> to vector<8x128xf32>
    %42 = vector.shape_cast %39 : vector<8x128xf32> to vector<1x8x128xf32>
    tpu.vector_store %arg4[%c2_22, %c0_23, %c0_24], %42 {strides = array<i32>} : memref<5x8x128xf32, #tpu.memory_space<vmem>>, vector<1x8x128xf32>,
    %c3 = arith.constant 3 : index
    %c0_25 = arith.constant 0 : index
    %c0_26 = arith.constant 0 : index
    %43 = vector.load %arg4[%c3, %c0_25, %c0_26] : memref<5x8x128xf32, #tpu.memory_space<vmem>>, vector<1x8x128xf32>
    %44 = vector.shape_cast %43 : vector<1x8x128xf32> to vector<8x128xf32>
    %45 = vector.shape_cast %10 : vector<8x128xf32> to vector<1x8x128xf32>
    %cst_27 = arith.constant dense<0.000000e+00> : vector<8x128xf32>
    %46 = vector.multi_reduction <add>, %45, %cst_27 [0] : vector<1x8x128xf32> to vector<8x128xf32>
    %47 = arith.addf %44, %46 : vector<8x128xf32>
    %c3_28 = arith.constant 3 : index
    %c0_29 = arith.constant 0 : index
    %c0_30 = arith.constant 0 : index
    %48 = vector.load %arg4[%c3_28, %c0_29, %c0_30] : memref<5x8x128xf32, #tpu.memory_space<vmem>>, vector<1x8x128xf32>
    %49 = vector.shape_cast %48 : vector<1x8x128xf32> to vector<8x128xf32>
    %50 = vector.shape_cast %47 : vector<8x128xf32> to vector<1x8x128xf32>
    tpu.vector_store %arg4[%c3_28, %c0_29, %c0_30], %50 {strides = array<i32>} : memref<5x8x128xf32, #tpu.memory_space<vmem>>, vector<1x8x128xf32>,
    %c4 = arith.constant 4 : index
    %c0_31 = arith.constant 0 : index
    %c0_32 = arith.constant 0 : index
    %51 = vector.load %arg4[%c4, %c0_31, %c0_32] : memref<5x8x128xf32, #tpu.memory_space<vmem>>, vector<1x8x128xf32>
    %52 = vector.shape_cast %51 : vector<1x8x128xf32> to vector<8x128xf32>
    %53 = vector.shape_cast %17 : vector<8x128xf32> to vector<1x8x128xf32>
    %cst_33 = arith.constant dense<0.000000e+00> : vector<8x128xf32>
    %54 = vector.multi_reduction <add>, %53, %cst_33 [0] : vector<1x8x128xf32> to vector<8x128xf32>
    %55 = arith.addf %52, %54 : vector<8x128xf32>
    %c4_34 = arith.constant 4 : index
    %c0_35 = arith.constant 0 : index
    %c0_36 = arith.constant 0 : index
    %56 = vector.load %arg4[%c4_34, %c0_35, %c0_36] : memref<5x8x128xf32, #tpu.memory_space<vmem>>, vector<1x8x128xf32>
    %57 = vector.shape_cast %56 : vector<1x8x128xf32> to vector<8x128xf32>
    %58 = vector.shape_cast %55 : vector<8x128xf32> to vector<1x8x128xf32>
    tpu.vector_store %arg4[%c4_34, %c0_35, %c0_36], %58 {strides = array<i32>} : memref<5x8x128xf32, #tpu.memory_space<vmem>>, vector<1x8x128xf32>,
    return
  }
  func.func @transform_0(%arg0: i32, %arg1: i32) -> (i32, i32) {
    %c1_i32 = arith.constant 1 : i32
    %0 = arith.muli %arg0, %c1_i32 : i32
    %1 = arith.addi %0, %arg1 : i32
    %c0_i32 = arith.constant 0 : i32
    %c0_i32_0 = arith.constant 0 : i32
    return %1, %c0_i32 : i32, i32
  }
  func.func @transform_1(%arg0: i32, %arg1: i32) -> (i32, i32) {
    %c1_i32 = arith.constant 1 : i32
    %0 = arith.muli %arg0, %c1_i32 : i32
    %1 = arith.addi %0, %arg1 : i32
    %c0_i32 = arith.constant 0 : i32
    %c0_i32_0 = arith.constant 0 : i32
    return %1, %c0_i32 : i32, i32
  }
  func.func @transform_2(%arg0: i32, %arg1: i32) -> (i32, i32, i32) {
    %c0_i32 = arith.constant 0 : i32
    %c0_i32_0 = arith.constant 0 : i32
    %c0_i32_1 = arith.constant 0 : i32
    return %arg0, %c0_i32, %c0_i32_0 : i32, i32, i32
  }
}

</mosaic_0001>

<bundles_post_ra>
// kernel: tpu_custom_call.1
= control target key start
LH: loop header
LB: loop body
LE: loop exit
PB: predicated region body
PF: predicated region fallthrough
CT: control target
= control target key end

     0   :  { %7 = vsyncpa [#allocation3], 0  ;;  %s242_s0 = inlined_call_operand.hbm [shape: f32[8,128], index: 0, kind: input, shape index: {}]   ;;  %s243_s1 = inlined_call_operand.hbm [shape: f32[8,128], index: 1, kind: input, shape index: {}]   ;;  %s244_s2 = inlined_call_operand.hbm [shape: f32[5,8,128], index: 2, kind: output, shape index: {}]  }
   0x1   :  { %8 = vsyncpa [#allocation6], 0 }
   0x2   :  { %9 = vsyncpa [#allocation4], 0  ;;  %s186_s9 = smov [#allocation2]   ;;  %s187_s11 = smov [#allocation5]  }
   0x3   :  { %s19_s10 = sshll.u32 %s186_s9, 4  ;;  %s32_s12 = sshll.u32 %s187_s11, 4  ;;  %s20_s10 = int_to_ptr.vmem [resolvable:$true] %s19_s10  ;;  %s33_s12 = int_to_ptr.vmem [resolvable:$true] %s32_s12 }
   0x4   :  { %s114_s15 = scalar_lea.hbm %s242_s0, 128 }
   0x5   :  { %p115_p0 = scmp.ne.s32.totalorder %s242_s0, %s114_s15  ;;  %p118_p1 = scmp.lt.u32.totalorder %s114_s15, %s242_s0 }
   0x7   :  { %p120_p2 = pnand %p118_p1, %p115_p0 }
   0x9   :  { %123 = shalt.err (!%p120_p2)
}
   0xa   :  { %s124_s20 = scalar_lea.vmem %s20_s10, 128  ;;  %p129_p4 = scmp.lt.s32.totalorder %s20_s10, %s20_s10 }
   0xb   :  { %p125_p3 = scmp.ne.s32.totalorder %s20_s10, %s124_s20  ;;  %p130_p5 = scmp.lt.s32.totalorder %s124_s20, %s124_s20 }
   0xd   :  { %p131_p6 = por %p130_p5, %p129_p4 }
   0xf   :  { %p132_p7 = pnand %p131_p6, %p125_p3 }
  0x11   :  { %135 = shalt.err (!%p132_p7)
}
  0x12   :  { %22 = dma.hbm_to_vmem [thread:$0]  %s242_s0, 128, %s20_s10, [#allocation3]  }
  0x13   :  { %s136_s25 = scalar_lea.hbm %s243_s1, 128 }
  0x14   :  { %p137_p8 = scmp.ne.s32.totalorder %s243_s1, %s136_s25  ;;  %p140_p9 = scmp.lt.u32.totalorder %s136_s25, %s243_s1 }
  0x16   :  { %p142_p10 = pnand %p140_p9, %p137_p8 }
  0x18   :  { %145 = shalt.err (!%p142_p10)
}
  0x19   :  { %s146_s30 = scalar_lea.vmem %s33_s12, 128  ;;  %p151_p12 = scmp.lt.s32.totalorder %s33_s12, %s33_s12 }
  0x1a   :  { %p147_p11 = scmp.ne.s32.totalorder %s33_s12, %s146_s30  ;;  %p152_p13 = scmp.lt.s32.totalorder %s146_s30, %s146_s30 }
  0x1c   :  { %p153_p0 = por %p152_p13, %p151_p12 }
  0x1e   :  { %p154_p1 = pnand %p153_p0, %p147_p11 }
  0x20   :  { %157 = shalt.err (!%p154_p1)
}
  0x21   :  { %35 = dma.hbm_to_vmem [thread:$0]  %s243_s1, 128, %s33_s12, [#allocation6]  }
  0x22   :  { %180 = dma.done.wait [#allocation3], 128  }
  0x23   :  { %181 = vsyncadd [#allocation3], 4294967168 }
  0x24   :  { %182 = dma.done.wait [#allocation6], 128  }
  0x25   :  { %183 = vsyncadd [#allocation6], 4294967168  ;;  %v53_v0 = vld [vmem:[#allocation2] sm:$0xff]  ;;  %v54_v1 = vld [vmem:[#allocation5] sm:$0xff]  ;;  %s188_s1 = smov [#allocation7]  }
  0x26   :  { %v55_v2 = vsub.f32 %v53_v0, %v54_v1  ;;  %v57_v3 = vmax.f32 %v53_v0, 0.0  ;;  %v76_v4 = vmul.f32 %v54_v1, %v54_v1  ;;  %73 = vst [vmem:[#allocation7 + $0x8] sm:$0xff] %v54_v1  ;;  %s95_s4 = sshll.u32 %s188_s1, 4  ;;  %s96_s4 = int_to_ptr.vmem [resolvable:$true] %s95_s4 }
  0x27   :  { %s158_s5 = scalar_lea.vmem %s96_s4, 640  ;;  %p163_p3 = scmp.lt.s32.totalorder %s96_s4, %s96_s4 }
  0x28   :  { %v56_v5 = vmul.f32 %v55_v2, %v55_v2  ;;  %v58_v6 = vmin.f32 %v57_v3, 3.0  ;;  %79 = vst [vmem:[#allocation7 + $0x10] sm:$0xff] %v76_v4  ;;  %p159_p2 = scmp.ne.s32.totalorder %s96_s4, %s158_s5  ;;  %p164_p4 = scmp.lt.s32.totalorder %s158_s5, %s158_s5 }
  0x2a   :  { %v59_v7 = vfloor.f32 %v58_v6  ;;  %68 = vst [vmem:[#allocation7] sm:$0xff] %v56_v5  ;;  %84 = vst [vmem:[#allocation7 + $0x18] sm:$0xff] %v58_v6  ;;  %v61_v9 = vmul.f32 %v58_v6, %v58_v6  ;;  %p165_p5 = por %p164_p4, %p163_p3 }
  0x2c   :  { %v60_v8 = vsub.f32 %v58_v6, %v59_v7  ;;  %p166_p6 = pnand %p165_p5, %p159_p2 }
  0x2e   :  { %v62_v10 = vsub.f32 1.0, %v60_v8 }
  0x30   :  { %v63_v11 = vmul.f32 %v62_v10, %v60_v8 }
  0x32   :  { %v64_v12 = vadd.f32 %v63_v11, %v61_v9 }
  0x34   :  { %89 = vst [vmem:[#allocation7 + $0x20] sm:$0xff] %v64_v12 }
  0x35   :  { %169 = shalt.err (!%p166_p6)
}
  0x36   :  { %s170_s8 = scalar_lea.hbm %s244_s2, 640 }
  0x37   :  { %p171_p7 = scmp.ne.s32.totalorder %s244_s2, %s170_s8  ;;  %p174_p8 = scmp.lt.u32.totalorder %s170_s8, %s244_s2 }
  0x39   :  { %p176_p9 = pnand %p174_p8, %p171_p7 }
  0x3b   :  { %179 = shalt.err (!%p176_p9)
}
  0x3c   :  { %s189_s13 = smov 128   ;;  %s190_s14 = smov 8  }
  0x3d   :  { %101 = dma.vmem_to_hbm [thread:$0]  %s96_s4, 640, %s244_s2, [#allocation4], %s189_s13, %s189_s13, %s190_s14  }
  0x3e   :  { %184 = dma.done.wait [#allocation4], 640  }
  0x3f   :  { %185 = vsyncadd [#allocation4], 4294966656 }
  0x40   :  { %105 = vsyncpa [#allocation3], 1 }
  0x41   :  { %106 = vsyncpa [#allocation6], 1 }
  0x42   :  { %107 = vsyncpa [#allocation4], 1 }

</bundles_post_ra>
